<compile_context>
chip_gen: v7x
topology: tpu7x:2x2x1
jax: 0.10.0
libtpu: 0.0.40
codegen_flags: <defaults>
</compile_context>

<pallas_src>
import jax
import jax.numpy as jnp
from jax.experimental import pallas as pl
from jax.experimental.pallas import tpu as pltpu

LATENT = 128       # GNN latent_size
MLP_HIDDEN = 512   # GNN mlp_hidden_size
LN_EPS = 1e-5
BN_EPS = 1e-5


# ----------------------------------------------------------------------------
# Fused kernel: GNN surrogate + both prediction heads in one pallas_call.
# ----------------------------------------------------------------------------
def _metabo_fused_kernel(adj_ref, x_ref, pool_ref,
                         gw1_ref, gb1_ref, gw2_ref, molb_ref,
                         hw1_ref, hb1_ref, hw2_ref, hb2_ref,
                         scale_ref, offset_ref,
                         out_ref):
    f32 = jnp.float32
    bf16 = jnp.bfloat16

    # ---- GNN backbone surrogate -------------------------------------------
    # TODO(synk): the real backbone (external `GNN` with node/edge/face message
    # passing, attention, dropedge/dropnode, pretrained GraphCL weights) is not
    # defined in train.py; this is a deterministic surrogate -- one round of
    # dense message passing (block-diagonal adjacency) followed by a 2-layer
    # MLP (hidden 512 -> latent 128, matching mlp_hidden_size/mlp_layers) and
    # sum graph pooling (graph_pooling='sum').
    msg = jnp.dot(adj_ref[...], x_ref[...],
                  preferred_element_type=f32)                        # (BN, F)
    h = jnp.dot(msg.astype(bf16), gw1_ref[...],
                preferred_element_type=f32) + gb1_ref[...]           # (BN, 512)
    h = jnp.maximum(h, 0.0)
    # Sum pooling (exact f32, 0/1 weights) BEFORE the second linear layer;
    # its bias is pre-folded into molb (= nodes_per_graph * gb2).
    pooled_h = jnp.dot(pool_ref[...], h,
                       preferred_element_type=f32)                   # (B, 512)
    mol = jnp.dot(pooled_h.astype(bf16), gw2_ref[...],
                  preferred_element_type=f32) + molb_ref[...]        # (B, 128)

    # ---- fused fc1 / fc2 heads ---------------------------------------------
    # Shared LayerNorm statistics; each head's LN affine + Linear + eval-mode
    # BatchNorm are pre-folded into hw1/hb1 (done once in the wrapper).
    mu = jnp.mean(mol, axis=-1, keepdims=True)
    var = jnp.mean((mol - mu) ** 2, axis=-1, keepdims=True)
    xhat = (mol - mu) * jax.lax.rsqrt(var + LN_EPS)                  # (B, 128)
    y = jnp.dot(xhat.astype(bf16), hw1_ref[...],
                preferred_element_type=f32) + hb1_ref[...]           # (B, 256)
    y = jnp.maximum(y, 0.0)                                          # Dropout->id; ReLU
    logits = jnp.dot(y.astype(bf16), hw2_ref[...],
                     preferred_element_type=f32) + hb2_ref[...]      # (B, 128) lane-dense
    # lane 0: sigmoid(l1)*100 ; lane 1: (sigmoid(l2)-0.5)*200 = sigmoid(l2)*200-100
    # lanes 2..127: zero padding (scale=offset=0) -> single unmasked store.
    out_ref[...] = jax.nn.sigmoid(logits) * scale_ref[...] + offset_ref[...]


# ----------------------------------------------------------------------------
# Wrapper: parameter folding + packing, then one pallas_call.
# ----------------------------------------------------------------------------
def metabo_gnn_forward(adj, x, gnn_params, head1_params, head2_params,
                       mode='MetaboGNN'):
    B, N, F = x.shape
    BN = B * N
    gw1, gb1, gw2, gb2 = gnn_params

    # Block-diagonal adjacency -> one (BN,BN)@(BN,F) message-passing matmul.
    adj_bd = jax.scipy.linalg.block_diag(*[adj[b] for b in range(B)])  # (BN, BN)
    x_flat = x.reshape(BN, F)
    # Block-one-hot pooling matrix: sum graph pooling on the MXU.
    pool = jnp.kron(jnp.eye(B, dtype=jnp.float32),
                    jnp.ones((1, N), jnp.float32))                    # (B, BN)
    # Second-layer GNN bias folded through sum pooling: per-graph node count * gb2.
    molb = pool.sum(axis=1, keepdims=True) * gb2                      # (B, 128)

    # Fold LayerNorm affine + Linear(128,128) + eval-mode BatchNorm1d into a
    # single affine per head (valid because there is no nonlinearity between
    # them at inference time).
    def fold_head(params):
        w1, vec, w2, b2 = params
        ln_g, ln_b, lin_b, bn_g, bn_b, bn_m, bn_v = (vec[i] for i in range(7))
        s = bn_g * jax.lax.rsqrt(bn_v + BN_EPS)
        t = bn_b - bn_m * s
        w_eff = (ln_g[:, None] * w1) * s[None, :]                     # (128, 128)
        b_eff = (ln_b @ w1 + lin_b) * s + t                           # (128,)
        return w_eff, b_eff, w2[:, 0], b2[0, 0]

    w1a, b1a, w2a, b2a = fold_head(head1_params)
    w1b, b1b, w2b, b2b = fold_head(head2_params)

    hw1 = jnp.concatenate([w1a, w1b], axis=1)                         # (128, 256)
    hb1 = jnp.concatenate([b1a, b1b])[None, :]                        # (1, 256)
    hw2 = jnp.zeros((2 * LATENT, LATENT), jnp.float32)
    hw2 = hw2.at[:LATENT, 0].set(w2a).at[LATENT:, 1].set(w2b)         # (256, 128)
    hb2 = jnp.zeros((1, LATENT), jnp.float32).at[0, 0].set(b2a).at[0, 1].set(b2b)
    scale = jnp.zeros((1, LATENT), jnp.float32).at[0, 0].set(100.0).at[0, 1].set(200.0)
    offset = jnp.zeros((1, LATENT), jnp.float32).at[0, 1].set(-100.0)

    bf16 = jnp.bfloat16
    out = pl.pallas_call(
        _metabo_fused_kernel,
        out_shape=jax.ShapeDtypeStruct((B, LATENT), jnp.float32),
        in_specs=[pl.BlockSpec(memory_space=pltpu.MemorySpace.VMEM)] * 13,
        out_specs=pl.BlockSpec(memory_space=pltpu.MemorySpace.VMEM),
    )(adj_bd.astype(bf16), x_flat.astype(bf16), pool,
      gw1.astype(bf16), gb1, gw2.astype(bf16), molb,
      hw1.astype(bf16), hb1, hw2.astype(bf16), hb2,
      scale, offset)

    out1 = out[:, 0]
    out2 = out[:, 1] if mode == 'MetaboGNN' else out1
    return out1, out2


# ----------------------------------------------------------------------------
# Pure-JAX f32 reference (unfused, unfolded math) for a sanity check.
# ----------------------------------------------------------------------------
def _reference(adj, x, gnn_params, head1_params, head2_params, mode='MetaboGNN'):
    w1, b1, w2, b2 = gnn_params
    msg = jnp.einsum('bij,bjf->bif', adj, x)
    h = jnp.maximum(jnp.einsum('bif,fh->bih', msg, w1) + b1[None], 0.0)
    z = jnp.einsum('bih,hl->bil', h, w2) + b2[None]
    mol = jnp.sum(z, axis=1)

    def head(params):
        w1h, vec, w2h, b2h = params
        ln_g, ln_b, lin_b, bn_g, bn_b, bn_m, bn_v = [vec[i] for i in range(7)]
        mu = jnp.mean(mol, axis=-1, keepdims=True)
        var = jnp.mean((mol - mu) ** 2, axis=-1, keepdims=True)
        xln = (mol - mu) / jnp.sqrt(var + LN_EPS) * ln_g + ln_b
        y = xln @ w1h + lin_b
        y = (y - bn_m) / jnp.sqrt(bn_v + BN_EPS) * bn_g + bn_b
        y = jnp.maximum(y, 0.0)
        return (y @ w2h + b2h)[:, 0]

    out1 = jax.nn.sigmoid(head(head1_params)) * 100.0
    if mode == 'MetaboGNN':
        out2 = (jax.nn.sigmoid(head(head2_params)) - 0.5) * 200.0
    else:
        out2 = out1
    return out1, out2


# ----------------------------------------------------------------------------
# Deterministic synthetic parameters (no checkpoint load).
# ----------------------------------------------------------------------------
def make_params(key, feat_dim):
    k = jax.random.split(key, 8)
    gw1 = jax.random.normal(k[0], (feat_dim, MLP_HIDDEN), jnp.float32) / jnp.sqrt(feat_dim)
    gb1 = jnp.zeros((1, MLP_HIDDEN), jnp.float32)
    gw2 = jax.random.normal(k[1], (MLP_HIDDEN, LATENT), jnp.float32) / jnp.sqrt(MLP_HIDDEN)
    gb2 = jnp.zeros((1, LATENT), jnp.float32)
    gnn_params = (gw1, gb1, gw2, gb2)

    def head(kk):
        k1, k2, k3 = jax.random.split(kk, 3)
        w1 = jax.random.normal(k1, (LATENT, LATENT), jnp.float32) / jnp.sqrt(LATENT)
        vec = jnp.stack([
            jnp.ones((LATENT,), jnp.float32),                          # LN gamma
            jnp.zeros((LATENT,), jnp.float32),                         # LN beta
            0.01 * jax.random.normal(k2, (LATENT,), jnp.float32),      # lin1 bias
            jnp.ones((LATENT,), jnp.float32),                          # BN gamma
            jnp.zeros((LATENT,), jnp.float32),                         # BN beta
            jnp.zeros((LATENT,), jnp.float32),                         # BN running mean
            jnp.ones((LATENT,), jnp.float32),                          # BN running var
        ])
        # final Linear(128,1): weight ~ N(0, 0.01) as in the module __init__
        w2 = 0.01 * jax.random.normal(k3, (LATENT, 1), jnp.float32)
        b2 = jnp.zeros((1, 1), jnp.float32)
        return (w1, vec, w2, b2)

    return gnn_params, head(k[2]), head(k[3])


if __name__ == "__main__":
    B, N, F = 4, 16, 32                     # batch of graphs, nodes, node feat dim
    key = jax.random.PRNGKey(0)
    kx, ka, kp = jax.random.split(key, 3)

    x = 0.1 * jax.random.normal(kx, (B, N, F), jnp.float32)
    adj_rand = (jax.random.uniform(ka, (B, N, N)) < 0.3).astype(jnp.float32)
    adj = jnp.clip(adj_rand + jnp.transpose(adj_rand, (0, 2, 1))
                   + jnp.eye(N, dtype=jnp.float32)[None], 0.0, 1.0)

    gnn_params, head1_params, head2_params = make_params(kp, F)

    out1, out2 = metabo_gnn_forward(adj, x, gnn_params, head1_params,
                                    head2_params, mode='MetaboGNN')
    jax.block_until_ready((out1, out2))

    r1, r2 = _reference(adj, x, gnn_params, head1_params, head2_params,
                        mode='MetaboGNN')
    assert out1.shape == (B,) and out2.shape == (B,)
    # Outputs are sigmoid * 100 / * 200 scaled; bf16 matmul inputs (f32 accum)
    # give sub-0.5 absolute error on that 100/200-unit scale.
    assert jnp.allclose(out1, r1, rtol=2e-2, atol=5e-1)
    assert jnp.allclose(out2, r2, rtol=2e-2, atol=5e-1)

    print("KERNEL_OK")
</pallas_src>

<mosaic_0001>
module attributes {stable_mosaic.version = 11 : i64} {
  func.func @_metabo_fused_kernel(%arg0: memref<64x64xbf16, #tpu.memory_space<vmem>>, %arg1: memref<64x32xbf16, #tpu.memory_space<vmem>>, %arg2: memref<4x64xf32, #tpu.memory_space<vmem>>, %arg3: memref<32x512xbf16, #tpu.memory_space<vmem>>, %arg4: memref<1x512xf32, #tpu.memory_space<vmem>>, %arg5: memref<512x128xbf16, #tpu.memory_space<vmem>>, %arg6: memref<4x128xf32, #tpu.memory_space<vmem>>, %arg7: memref<128x256xbf16, #tpu.memory_space<vmem>>, %arg8: memref<1x256xf32, #tpu.memory_space<vmem>>, %arg9: memref<256x128xbf16, #tpu.memory_space<vmem>>, %arg10: memref<1x128xf32, #tpu.memory_space<vmem>>, %arg11: memref<1x128xf32, #tpu.memory_space<vmem>>, %arg12: memref<1x128xf32, #tpu.memory_space<vmem>>, %arg13: memref<4x128xf32, #tpu.memory_space<vmem>>) attributes {dimension_semantics = [], scalar_prefetch = 0 : i64, scratch_operands = 0 : i64, tpu.core_type = #tpu.core_type<tc>} {
    %c0 = arith.constant 0 : index
    %c0_0 = arith.constant 0 : index
    %0 = vector.load %arg0[%c0, %c0_0] : memref<64x64xbf16, #tpu.memory_space<vmem>>, vector<64x64xbf16>
    %c0_1 = arith.constant 0 : index
    %c0_2 = arith.constant 0 : index
    %1 = vector.load %arg1[%c0_1, %c0_2] : memref<64x32xbf16, #tpu.memory_space<vmem>>, vector<64x32xbf16>
    %cst = arith.constant dense<0.000000e+00> : vector<64x32xf32>
    %2 = tpu.matmul %0, %1, %cst {dimension_numbers = #tpu.dot_dimension_numbers<[1], [0], [0], [1], [0, 0, 1, 1], [], []>} : vector<64x64xbf16>, vector<64x32xbf16>, vector<64x32xf32> -> vector<64x32xf32>
    %3 = arith.truncf %2 : vector<64x32xf32> to vector<64x32xbf16>
    %c0_3 = arith.constant 0 : index
    %c0_4 = arith.constant 0 : index
    %4 = vector.load %arg3[%c0_3, %c0_4] : memref<32x512xbf16, #tpu.memory_space<vmem>>, vector<32x512xbf16>
    %cst_5 = arith.constant dense<0.000000e+00> : vector<64x512xf32>
    %5 = tpu.matmul %3, %4, %cst_5 {dimension_numbers = #tpu.dot_dimension_numbers<[1], [0], [0], [1], [0, 0, 1, 1], [], []>} : vector<64x32xbf16>, vector<32x512xbf16>, vector<64x512xf32> -> vector<64x512xf32>
    %c0_6 = arith.constant 0 : index
    %c0_7 = arith.constant 0 : index
    %6 = vector.load %arg4[%c0_6, %c0_7] : memref<1x512xf32, #tpu.memory_space<vmem>>, vector<1x512xf32>
    %7 = vector.broadcast %6 : vector<1x512xf32> to vector<64x512xf32>
    %8 = arith.addf %5, %7 : vector<64x512xf32>
    %cst_8 = arith.constant 0.000000e+00 : f32
    %9 = vector.broadcast %cst_8 : f32 to vector<64x512xf32>
    %10 = arith.maximumf %8, %9 : vector<64x512xf32>
    %c0_9 = arith.constant 0 : index
    %c0_10 = arith.constant 0 : index
    %11 = vector.load %arg2[%c0_9, %c0_10] : memref<4x64xf32, #tpu.memory_space<vmem>>, vector<4x64xf32>
    %cst_11 = arith.constant dense<0.000000e+00> : vector<4x512xf32>
    %12 = tpu.matmul %11, %10, %cst_11 {dimension_numbers = #tpu.dot_dimension_numbers<[1], [0], [0], [1], [0, 0, 1, 1], [], []>} : vector<4x64xf32>, vector<64x512xf32>, vector<4x512xf32> -> vector<4x512xf32>
    %13 = arith.truncf %12 : vector<4x512xf32> to vector<4x512xbf16>
    %c0_12 = arith.constant 0 : index
    %c0_13 = arith.constant 0 : index
    %14 = vector.load %arg5[%c0_12, %c0_13] : memref<512x128xbf16, #tpu.memory_space<vmem>>, vector<512x128xbf16>
    %cst_14 = arith.constant dense<0.000000e+00> : vector<4x128xf32>
    %15 = tpu.matmul %13, %14, %cst_14 {dimension_numbers = #tpu.dot_dimension_numbers<[1], [0], [0], [1], [0, 0, 1, 1], [], []>} : vector<4x512xbf16>, vector<512x128xbf16>, vector<4x128xf32> -> vector<4x128xf32>
    %c0_15 = arith.constant 0 : index
    %c0_16 = arith.constant 0 : index
    %16 = vector.load %arg6[%c0_15, %c0_16] : memref<4x128xf32, #tpu.memory_space<vmem>>, vector<4x128xf32>
    %17 = arith.addf %15, %16 : vector<4x128xf32>
    %cst_17 = arith.constant dense<0.000000e+00> : vector<4xf32>
    %18 = vector.multi_reduction <add>, %17, %cst_17 [1] : vector<4x128xf32> to vector<4xf32>
    %19 = vector.shape_cast %18 : vector<4xf32> to vector<4x1xf32>
    %cst_18 = arith.constant 1.280000e+02 : f32
    %20 = vector.broadcast %cst_18 : f32 to vector<4x1xf32>
    %21 = arith.divf %19, %20 : vector<4x1xf32>
    %22 = vector.broadcast %21 : vector<4x1xf32> to vector<4x128xf32>
    %23 = arith.subf %17, %22 : vector<4x128xf32>
    %24 = arith.mulf %23, %23 : vector<4x128xf32>
    %cst_19 = arith.constant dense<0.000000e+00> : vector<4xf32>
    %25 = vector.multi_reduction <add>, %24, %cst_19 [1] : vector<4x128xf32> to vector<4xf32>
    %26 = vector.shape_cast %25 : vector<4xf32> to vector<4x1xf32>
    %cst_20 = arith.constant 1.280000e+02 : f32
    %27 = vector.broadcast %cst_20 : f32 to vector<4x1xf32>
    %28 = arith.divf %26, %27 : vector<4x1xf32>
    %29 = vector.broadcast %21 : vector<4x1xf32> to vector<4x128xf32>
    %30 = arith.subf %17, %29 : vector<4x128xf32>
    %cst_21 = arith.constant 9.99999974E-6 : f32
    %31 = vector.broadcast %cst_21 : f32 to vector<4x1xf32>
    %32 = arith.addf %28, %31 : vector<4x1xf32>
    %33 = math.rsqrt %32 : vector<4x1xf32>
    %34 = vector.broadcast %33 : vector<4x1xf32> to vector<4x128xf32>
    %35 = arith.mulf %30, %34 : vector<4x128xf32>
    %36 = arith.truncf %35 : vector<4x128xf32> to vector<4x128xbf16>
    %c0_22 = arith.constant 0 : index
    %c0_23 = arith.constant 0 : index
    %37 = vector.load %arg7[%c0_22, %c0_23] : memref<128x256xbf16, #tpu.memory_space<vmem>>, vector<128x256xbf16>
    %cst_24 = arith.constant dense<0.000000e+00> : vector<4x256xf32>
    %38 = tpu.matmul %36, %37, %cst_24 {dimension_numbers = #tpu.dot_dimension_numbers<[1], [0], [0], [1], [0, 0, 1, 1], [], []>} : vector<4x128xbf16>, vector<128x256xbf16>, vector<4x256xf32> -> vector<4x256xf32>
    %c0_25 = arith.constant 0 : index
    %c0_26 = arith.constant 0 : index
    %39 = vector.load %arg8[%c0_25, %c0_26] : memref<1x256xf32, #tpu.memory_space<vmem>>, vector<1x256xf32>
    %40 = vector.broadcast %39 : vector<1x256xf32> to vector<4x256xf32>
    %41 = arith.addf %38, %40 : vector<4x256xf32>
    %cst_27 = arith.constant 0.000000e+00 : f32
    %42 = vector.broadcast %cst_27 : f32 to vector<4x256xf32>
    %43 = arith.maximumf %41, %42 : vector<4x256xf32>
    %44 = arith.truncf %43 : vector<4x256xf32> to vector<4x256xbf16>
    %c0_28 = arith.constant 0 : index
    %c0_29 = arith.constant 0 : index
    %45 = vector.load %arg9[%c0_28, %c0_29] : memref<256x128xbf16, #tpu.memory_space<vmem>>, vector<256x128xbf16>
    %cst_30 = arith.constant dense<0.000000e+00> : vector<4x128xf32>
    %46 = tpu.matmul %44, %45, %cst_30 {dimension_numbers = #tpu.dot_dimension_numbers<[1], [0], [0], [1], [0, 0, 1, 1], [], []>} : vector<4x256xbf16>, vector<256x128xbf16>, vector<4x128xf32> -> vector<4x128xf32>
    %c0_31 = arith.constant 0 : index
    %c0_32 = arith.constant 0 : index
    %47 = vector.load %arg10[%c0_31, %c0_32] : memref<1x128xf32, #tpu.memory_space<vmem>>, vector<1x128xf32>
    %48 = vector.broadcast %47 : vector<1x128xf32> to vector<4x128xf32>
    %49 = arith.addf %46, %48 : vector<4x128xf32>
    %50 = arith.negf %49 : vector<4x128xf32>
    %51 = math.exp %50 : vector<4x128xf32>
    %cst_33 = arith.constant 1.000000e+00 : f32
    %52 = vector.broadcast %cst_33 : f32 to vector<4x128xf32>
    %53 = arith.addf %52, %51 : vector<4x128xf32>
    %54 = arith.divf %52, %53 : vector<4x128xf32>
    %c0_34 = arith.constant 0 : index
    %c0_35 = arith.constant 0 : index
    %55 = vector.load %arg11[%c0_34, %c0_35] : memref<1x128xf32, #tpu.memory_space<vmem>>, vector<1x128xf32>
    %56 = vector.broadcast %55 : vector<1x128xf32> to vector<4x128xf32>
    %57 = arith.mulf %54, %56 : vector<4x128xf32>
    %c0_36 = arith.constant 0 : index
    %c0_37 = arith.constant 0 : index
    %58 = vector.load %arg12[%c0_36, %c0_37] : memref<1x128xf32, #tpu.memory_space<vmem>>, vector<1x128xf32>
    %59 = vector.broadcast %58 : vector<1x128xf32> to vector<4x128xf32>
    %60 = arith.addf %57, %59 : vector<4x128xf32>
    %c0_38 = arith.constant 0 : index
    %c0_39 = arith.constant 0 : index
    %61 = vector.load %arg13[%c0_38, %c0_39] : memref<4x128xf32, #tpu.memory_space<vmem>>, vector<4x128xf32>
    tpu.vector_store %arg13[%c0_38, %c0_39], %60 {strides = array<i32>} : memref<4x128xf32, #tpu.memory_space<vmem>>, vector<4x128xf32>,
    return
  }
}

</mosaic_0001>

<bundles_post_ra>
// kernel: tpu_custom_call.1
= control target key start
LH: loop header
LB: loop body
LE: loop exit
PB: predicated region body
PF: predicated region fallthrough
CT: control target
= control target key end

     0   :  { %18 = vsyncpa [#allocation3], 0  ;;  %s2093_s0 = inlined_call_operand.vmem [shape: bf16[64,64], index: 0, kind: input, shape index: {}]   ;;  %s2094_s1 = inlined_call_operand.vmem [shape: bf16[64,32], index: 1, kind: input, shape index: {}]   ;;  %s2095_s2 = inlined_call_operand.vmem [shape: f32[4,64], index: 2, kind: input, shape index: {}]   ;;  %s2096_s3 = inlined_call_operand.hbm [shape: bf16[32,512], index: 3, kind: input, shape index: {}]   ;;  %s2097_s4 = inlined_call_operand.vmem [shape: f32[1,512], index: 4, kind: input, shape index: {}]   ;;  %s2098_s5 = inlined_call_operand.hbm [shape: bf16[512,128], index: 5, kind: input, shape index: {}]   ;;  %s2099_s6 = inlined_call_operand.vmem [shape: f32[4,128], index: 6, kind: input, shape index: {}]   ;;  %s2100_s7 = inlined_call_operand.hbm [shape: bf16[128,256], index: 7, kind: input, shape index: {}]   ;;  %s2101_s8 = inlined_call_operand.vmem [shape: f32[1,256], index: 8, kind: input, shape index: {}]   ;;  %s2102_s9 = inlined_call_operand.hbm [shape: bf16[256,128], index: 9, kind: input, shape index: {}]   ;;  %s2103_s10 = inlined_call_operand.vmem [shape: f32[1,128], index: 10, kind: input, shape index: {}]   ;;  %s2104_s11 = inlined_call_operand.vmem [shape: f32[1,128], index: 11, kind: input, shape index: {}]   ;;  %s2105_s12 = inlined_call_operand.vmem [shape: f32[1,128], index: 12, kind: input, shape index: {}]   ;;  %s2106_s13 = inlined_call_operand.hbm [shape: f32[4,128], index: 13, kind: output, shape index: {}]  }
   0x1   :  { %19 = vsyncpa [#allocation6], 0 }
   0x2   :  { %20 = vsyncpa [#allocation9], 0 }
   0x3   :  { %21 = vsyncpa [#allocation4], 0  ;;  %s1828_s25 = smov [#allocation5]   ;;  %s1710_s29 = scalar_lea.hbm %s2098_s5, 4096 }
   0x4   :  { %s47_s26 = sshll.u32 %s1828_s25, 4  ;;  %p1711_p0 = scmp.ne.s32.totalorder %s2098_s5, %s1710_s29  ;;  %s48_s26 = int_to_ptr.vmem [resolvable:$true] %s47_s26 }
   0x5   :  { %p1714_p1 = scmp.lt.u32.totalorder %s1710_s29, %s2098_s5 }
   0x7   :  { %p1716_p2 = pnand %p1714_p1, %p1711_p0 }
   0x9   :  { %1719 = shalt.err (!%p1716_p2)
}
   0xa   :  { %s1720_s17 = scalar_lea.vmem %s48_s26, 4096  ;;  %p1725_p4 = scmp.lt.s32.totalorder %s48_s26, %s48_s26 }
   0xb   :  { %p1721_p3 = scmp.ne.s32.totalorder %s48_s26, %s1720_s17  ;;  %p1726_p5 = scmp.lt.s32.totalorder %s1720_s17, %s1720_s17 }
   0xd   :  { %p1727_p6 = por %p1726_p5, %p1725_p4 }
   0xf   :  { %p1728_p7 = pnand %p1727_p6, %p1721_p3 }
  0x11   :  { %1731 = shalt.err (!%p1728_p7)
}
  0x12   :  { %s1829_s18 = smov 64   ;;  %s1830_s19 = smov 4  }
  0x13   :  { %53 = dma.hbm_to_vmem [thread:$0]  %s2098_s5, 4096, %s48_s26, [#allocation6], %s1829_s18, %s1829_s18, %s1830_s19  }
  0x14   :  { %s1831_s22 = smov [#allocation2]   ;;  %s1732_s27 = scalar_lea.hbm %s2096_s3, 1024 }
  0x15   :  { %s33_s23 = sshll.u32 %s1831_s22, 4  ;;  %p1733_p8 = scmp.ne.s32.totalorder %s2096_s3, %s1732_s27  ;;  %s34_s23 = int_to_ptr.vmem [resolvable:$true] %s33_s23 }
  0x16   :  { %p1736_p9 = scmp.lt.u32.totalorder %s1732_s27, %s2096_s3 }
  0x18   :  { %p1738_p10 = pnand %p1736_p9, %p1733_p8 }
  0x1a   :  { %1741 = shalt.err (!%p1738_p10)
}
  0x1b   :  { %s1742_s15 = scalar_lea.vmem %s34_s23, 1024  ;;  %p1747_p12 = scmp.lt.s32.totalorder %s34_s23, %s34_s23 }
  0x1c   :  { %p1743_p11 = scmp.ne.s32.totalorder %s34_s23, %s1742_s15  ;;  %p1748_p13 = scmp.lt.s32.totalorder %s1742_s15, %s1742_s15 }
  0x1e   :  { %p1749_p0 = por %p1748_p13, %p1747_p12 }
  0x20   :  { %p1750_p1 = pnand %p1749_p0, %p1743_p11 }
  0x22   :  { %1753 = shalt.err (!%p1750_p1)
}
  0x23   :  { %s1832_s5 = smov 256   ;;  %s1833_s26 = smov 16  }
  0x24   :  { %39 = dma.hbm_to_vmem [thread:$0]  %s2096_s3, 1024, %s34_s23, [#allocation3], %s1832_s5, %s1832_s5, %s1833_s26  }
  0x25   :  { %s1834_s20 = smov [#allocation7]   ;;  %s1754_s25 = scalar_lea.hbm %s2100_s7, 2048 }
  0x26   :  { %s61_s21 = sshll.u32 %s1834_s20, 4  ;;  %p1755_p2 = scmp.ne.s32.totalorder %s2100_s7, %s1754_s25  ;;  %s62_s21 = int_to_ptr.vmem [resolvable:$true] %s61_s21 }
  0x27   :  { %p1758_p3 = scmp.lt.u32.totalorder %s1754_s25, %s2100_s7 }
  0x29   :  { %p1760_p4 = pnand %p1758_p3, %p1755_p2 }
  0x2b   :  { %1763 = shalt.err (!%p1760_p4)
}
  0x2c   :  { %s1764_s14 = scalar_lea.vmem %s62_s21, 2048  ;;  %p1769_p6 = scmp.lt.s32.totalorder %s62_s21, %s62_s21 }
  0x2d   :  { %p1765_p5 = scmp.ne.s32.totalorder %s62_s21, %s1764_s14  ;;  %p1770_p7 = scmp.lt.s32.totalorder %s1764_s14, %s1764_s14 }
  0x2f   :  { %p1771_p8 = por %p1770_p7, %p1769_p6 }
  0x31   :  { %p1772_p9 = pnand %p1771_p8, %p1765_p5 }
  0x33   :  { %1775 = shalt.err (!%p1772_p9)
}
  0x34   :  { %s1835_s3 = smov 128   ;;  %s1836_s23 = smov 8  }
  0x35   :  { %67 = dma.hbm_to_vmem [thread:$0]  %s2100_s7, 2048, %s62_s21, [#allocation6], %s1835_s3, %s1835_s3, %s1836_s23  }
  0x36   :  { %s1837_s26 = smov [#allocation8]   ;;  %s1776_s22 = scalar_lea.hbm %s2102_s9, 2048 }
  0x37   :  { %s75_s16 = sshll.u32 %s1837_s26, 4  ;;  %p1777_p10 = scmp.ne.s32.totalorder %s2102_s9, %s1776_s22  ;;  %s76_s16 = int_to_ptr.vmem [resolvable:$true] %s75_s16 }
  0x38   :  { %p1780_p11 = scmp.lt.u32.totalorder %s1776_s22, %s2102_s9 }
  0x3a   :  { %p1782_p12 = pnand %p1780_p11, %p1777_p10 }
  0x3c   :  { %1785 = shalt.err (!%p1782_p12)
}
  0x3d   :  { %s1786_s29 = scalar_lea.vmem %s76_s16, 2048  ;;  %p1791_p0 = scmp.lt.s32.totalorder %s76_s16, %s76_s16 }
  0x3e   :  { %p1787_p13 = scmp.ne.s32.totalorder %s76_s16, %s1786_s29  ;;  %p1792_p1 = scmp.lt.s32.totalorder %s1786_s29, %s1786_s29 }
  0x40   :  { %p1793_p2 = por %p1792_p1, %p1791_p0 }
  0x42   :  { %p1794_p3 = pnand %p1793_p2, %p1787_p13 }
  0x44   :  { %1797 = shalt.err (!%p1794_p3)
}
  0x45   :  { %81 = dma.hbm_to_vmem [thread:$0]  %s2102_s9, 2048, %s76_s16, [#allocation9], %s1829_s18, %s1829_s18, %s1830_s19  }
  0x46   :  { %1820 = dma.done.wait [#allocation3], 1024  }
  0x47   :  { %1821 = vsyncadd [#allocation3], 4294966272 }
  0x48   :  { %1822 = dma.done.wait [#allocation6], 6144  }
  0x49   :  { %1823 = vsyncadd [#allocation6], 4294961152 }
  0x4a   :  { %1824 = dma.done.wait [#allocation9], 2048  }
  0x4b   :  { %1825 = vsyncadd [#allocation9], 4294965248  ;;  %v1612_v0 = vld [vmem:[%s2094_s1] sm:$0xff]   ;;  %v1613_v1 = vld [vmem:[%s2094_s1 + $0x8] sm:$0xff]   ;;  %vm161_vm0 = vcmask 523264   ;;  %v1838_v13 = vmov 0   ;;  %v253_v44 = vlaneseq }
  0x4c   :  { %1547 = vmatprep.subr.bf16.mxu0 %v1612_v0  ;;  %v1614_v2 = vld [vmem:[%s2094_s1 + $0x10] sm:$0xff]   ;;  %v1616_v3 = vld [vmem:[%s2093_s0] sm:$0xff]   ;;  %v1615_v4 = vld [vmem:[%s2094_s1 + $0x18] sm:$0xff]   ;;  %378 = vmatprep.mubr.bf16.mxu1 %v1838_v13  ;;  %vm313_vm1 = vcmask 261120   ;;  %v1839_v29 = vmov 0.0   ;;  %vm991_vm2 = vcmask 1043456  }
  0x4d   :  { %1548 = vmatpush3.bf16.msra.mxu0 %v1612_v0  ;;  %1555 = vmatprep.mubr.msk.bf16.mxu0 %vm161_vm0, %v1616_v3  ;;  %v1622_v5 = vld [vmem:[#allocation2 + $0x4] ss:$16 sps:$4 sm:$0xff]   ;;  %v1620_v6 = vld [vmem:[#allocation2] ss:$16 sps:$4 sm:$0xff]   ;;  %v1617_v8 = vld [vmem:[%s2093_s0 + $0x8] sm:$0xff]   ;;  %v2010_v45 = vshrl.u32 %v253_v44, 7 }
  0x4e   :  { %1549 = vmatprep.subr.bf16.mxu0 %v1613_v1  ;;  %v1625_v7 = vld [vmem:[#allocation2 + $0x24] ss:$16 sps:$4 sm:$0xff]   ;;  %1595 = vmatprep.subr.bf16.mxu1 %v1622_v5  ;;  %v1623_v9 = vld [vmem:[#allocation2 + $0x20] ss:$16 sps:$4 sm:$0xff]   ;;  %v1619_v11 = vld [vmem:[%s2093_s0 + $0x18] sm:$0xff]  }
  0x4f   :  { %1597 = vmatpush1.bf16.msra.mxu1 %v1620_v6  ;;  %v1618_v10 = vld [vmem:[%s2093_s0 + $0x10] sm:$0xff]   ;;  %v1628_v12 = vld [vmem:[#allocation2 + $0xc] ss:$16 sps:$4 sm:$0xff]   ;;  %v1626_v19 = vld [vmem:[#allocation2 + $0x8] ss:$16 sps:$4 sm:$0xff]   ;;  %v255_v46 = vsub.s32 0, %v2010_v45 }
  0x50   :  { %1596 = vmatprep.subr.bf16.mxu1 %v1625_v7  ;;  %v1631_v21 = vld [vmem:[#allocation2 + $0x2c] ss:$16 sps:$4 sm:$0xff]   ;;  %v1629_v22 = vld [vmem:[#allocation2 + $0x28] ss:$16 sps:$4 sm:$0xff]   ;;  %v1632_v30 = vld [vmem:[#allocation5 + $0x40] sm:$0xff]   ;;  %v259_v48 = vsub.s32 1, %v2010_v45 }
  0x51   :  { %1550 = vmatpush3.bf16.msra.mxu0 %v1613_v1  ;;  %v1633_v31 = vld [vmem:[#allocation5] sm:$0xff]   ;;  %v1634_v32 = vld [vmem:[#allocation5 + $0x48] sm:$0xff]   ;;  %v1636_v34 = vld [vmem:[#allocation5 + $0x50] sm:$0xff]  }
  0x52   :  { %1551 = vmatprep.subr.bf16.mxu0 %v1614_v2  ;;  %v1635_v33 = vld [vmem:[#allocation5 + $0x8] sm:$0xff]   ;;  %v1637_v35 = vld [vmem:[#allocation5 + $0x10] sm:$0xff]   ;;  %v1638_v36 = vld [vmem:[#allocation5 + $0x58] sm:$0xff]  }
  0x53   :  { %1598 = vmatpush1.bf16.msra.mxu1 %v1623_v9  ;;  %v1639_v37 = vld [vmem:[#allocation5 + $0x18] sm:$0xff]   ;;  %v1640_v38 = vld [vmem:[#allocation5 + $0x60] sm:$0xff]   ;;  %v1642_v40 = vld [vmem:[#allocation5 + $0x68] sm:$0xff]  }
  0x54   :  { %v1641_v39 = vld [vmem:[#allocation5 + $0x20] sm:$0xff]   ;;  %v1644_v41 = vld [vmem:[#allocation5 + $0x28] sm:$0xff]   ;;  %v1646_v42 = vld [vmem:[#allocation5 + $0x70] sm:$0xff]  }
  0x55   :  { %1552 = vmatpush3.bf16.msra.mxu0 %v1614_v2  ;;  %v1648_v43 = vld [vmem:[#allocation5 + $0x30] sm:$0xff]   ;;  %v251_v47 = vld [vmem:[%s2097_s4] sm:$0xf] }
  0x56   :  { %1553 = vmatprep.subr.bf16.mxu0 %v1615_v4  ;;  %v256_v49 = vrot.slane %v251_v47, %v255_v46  ;;  %v2021_v50 = vrot.slane %v251_v47, %v259_v48 }
  0x59   :  { %1554 = vmatpush3.bf16.msra.mxu0 %v1615_v4 }
  0x5a   :  { %326 = vmatprep.subr.bf16.mxu0 %v1622_v5 }
  0x5c   :  { %1556 = vmatmul.mubr.msk.bf16.vlgmr.msra.gmra.mrb[0].mxu0 %vm161_vm0, %v1617_v8 }
  0x5d   :  { %1559 = vmatprep.mubr.msk.bf16.mxu0 %vm161_vm0, %v1618_v10  ;;  %327 = vmatpush1.bf16.msra.mxu0 %v1620_v6 }
  0x5e   :  { %328 = vmatprep.subr.bf16.mxu0 %v1625_v7  ;;  %v263_v7 = vsub.s32 2, %v2010_v45 }
  0x61   :  { %329 = vmatpush1.bf16.msra.mxu0 %v1623_v9 }
  0x62   :  { %399 = vmatprep.subr.bf16.mxu0 %v1628_v12  ;;  %v267_v12 = vsub.s32 3, %v2010_v45 }
  0x64   :  { %1560 = vmatmul.mubr.msk.bf16.gmra.mrb[4].mxu0 %vm161_vm0, %v1619_v11 }
  0x65   :  { %358 = vmatprep.mubr.bf16.mxu0 %v1838_v13 }
 0x12f   :  { %v1557_v14 = vpop.f32.mrb[0].mxu0 }
 0x130   :  { %v208_v15 = vpop.f32.mrb[1].mxu0 }
 0x131   :  { %v1558_v16 = vpop.f32.mrb[2].mxu0 }
 0x132   :  { %v240_v17 = vpack.c.bf16 %v1558_v16, %v1557_v14  ;;  %v211_v18 = vpop.f32.mrb[3].mxu0 }
 0x133   :  { %v239_v20 = vpack.c.bf16 %v211_v18, %v208_v15 }
 0x135   :  { %1395 = vmatmul.mubr.msk.bf16.vlgmr.msra.gmra.mrb[8].mxu0 %vm313_vm1, %v239_v20 }
 0x136   :  { %400 = vmatpush1.bf16.msra.mxu0 %v1626_v19  ;;  %368 = vmatprep.mubr.bf16.mxu0 %v1838_v13 }
 0x137   :  { %v1561_v23 = vpop.f32.mrb[4].mxu0  ;;  %401 = vmatprep.subr.bf16.mxu0 %v1631_v21 }
 0x138   :  { %v224_v24 = vpop.f32.mrb[5].mxu0 }
 0x139   :  { %v1562_v25 = vpop.f32.mrb[6].mxu0 }
 0x13a   :  { %v242_v26 = vpack.c.bf16 %v1562_v25, %v1561_v23  ;;  %v227_v27 = vpop.f32.mrb[7].mxu0  ;;  %402 = vmatpush1.bf16.msra.mxu0 %v1629_v22  ;;  %v2031_v25 = vrot.slane %v251_v47, %v263_v7 }
 0x13b   :  { %v241_v28 = vpack.c.bf16 %v227_v27, %v224_v24  ;;  %1481 = vmatprep.subr.bf16.mxu0 %v1632_v30  ;;  %v2033_v30 = vrot.slane %v251_v47, %v267_v12 }
 0x13d   :  { %1396 = vmatmul.mubr.msk.bf16.gmra.mrb[12].mxu0 %vm313_vm1, %v240_v17  ;;  %1397 = vmatmul.mubr.msk.bf16.vlgmr.msra.gmra.mrb[0].mxu1 %vm313_vm1, %v241_v28 }
 0x13e   :  { %388 = vmatprep.mubr.bf16.mxu1 %v1838_v13  ;;  %431 = vmatprep.mubr.bf16.mxu0 %v1838_v13 }
 0x145   :  { %1398 = vmatmul.mubr.msk.bf16.gmra.mrb[4].mxu1 %vm313_vm1, %v242_v26  ;;  %1399 = vmatmul.mubr.msk.bf16.vlgmr.msra.gmra.mrb[16].mxu0 %vm313_vm1, %v239_v20 }
 0x146   :  { %441 = vmatprep.mubr.bf16.mxu0 %v1838_v13  ;;  %572 = vmatprep.mubr.f32.mxu1 %v1839_v29 }
 0x147   :  { %1482 = vmatpush3.bf16.msra.mxu0 %v1633_v31 }
 0x148   :  { %1483 = vmatprep.subr.bf16.mxu0 %v1634_v32 }
 0x14b   :  { %1484 = vmatpush3.bf16.msra.mxu0 %v1635_v33 }
 0x14c   :  { %1485 = vmatprep.subr.bf16.mxu0 %v1636_v34 }
 0x14d   :  { %1400 = vmatmul.mubr.msk.bf16.gmra.mrb[20].mxu0 %vm313_vm1, %v240_v17 }
 0x14e   :  { %451 = vmatprep.mubr.bf16.mxu0 %v1838_v13 }
 0x14f   :  { %1486 = vmatpush3.bf16.msra.mxu0 %v1637_v35 }
 0x150   :  { %1487 = vmatprep.subr.bf16.mxu0 %v1638_v36 }
 0x153   :  { %1488 = vmatpush3.bf16.msra.mxu0 %v1639_v37 }
 0x154   :  { %1489 = vmatprep.subr.bf16.mxu0 %v1640_v38 }
 0x155   :  { %1401 = vmatmul.mubr.msk.bf16.gmra.mrb[24].mxu0 %vm313_vm1, %v241_v28 }
 0x156   :  { %461 = vmatprep.mubr.bf16.mxu0 %v1838_v13 }
 0x157   :  { %1490 = vmatpush3.bf16.msra.mxu0 %v1641_v39 }
 0x158   :  { %1491 = vmatprep.subr.bf16.mxu0 %v1642_v40 }
 0x15b   :  { %1492 = vmatpush3.bf16.msra.mxu0 %v1644_v41 }
 0x15c   :  { %1493 = vmatprep.subr.bf16.mxu0 %v1646_v42 }
 0x15d   :  { %1402 = vmatmul.mubr.msk.bf16.gmra.mrb[28].mxu0 %vm313_vm1, %v242_v26 }
 0x15f   :  { %1494 = vmatpush3.bf16.msra.mxu0 %v1648_v43 }
 0x208   :  { %v360_v51 = vpop.f32.mrb[8].mxu0 }
 0x209   :  { %v361_v52 = vadd.f32 %v360_v51, %v256_v49  ;;  %v362_v53 = vpop.f32.mrb[9].mxu0 }
 0x20a   :  { %v363_v54 = vadd.f32 %v362_v53, %v2021_v50  ;;  %v364_v55 = vpop.f32.mrb[10].mxu0 }
 0x20b   :  { %v365_v56 = vadd.f32 %v364_v55, %v256_v49  ;;  %v366_v57 = vpop.f32.mrb[11].mxu0  ;;  %v472_v59 = vmax.f32 %v361_v52, 0.0 }
 0x20c   :  { %v367_v58 = vadd.f32 %v366_v57, %v2021_v50  ;;  %v473_v61 = vmax.f32 %v363_v54, 0.0 }
 0x20d   :  { %v476_v60 = vmax.f32 %v365_v56, 0.0 }
 0x20e   :  { %v477_v62 = vmax.f32 %v367_v58, 0.0 }
 0x20f   :  { %v1565_v63 = vpack.c.bf16 %v476_v60, %v472_v59 }
 0x210   :  { %v1563_v0 = vpack.c.bf16 %v477_v62, %v473_v61  ;;  %v370_v1 = vpop.f32.mrb[12].mxu0  ;;  %v380_v2 = vpop.f32.mrb[0].mxu1 }
 0x211   :  { %v371_v3 = vadd.f32 %v370_v1, %v256_v49  ;;  %v372_v4 = vpop.f32.mrb[13].mxu0  ;;  %v381_v5 = vadd.f32 %v380_v2, %v256_v49  ;;  %v382_v6 = vpop.f32.mrb[1].mxu1 }
 0x212   :  { %v373_v8 = vadd.f32 %v372_v4, %v2021_v50  ;;  %v374_v9 = vpop.f32.mrb[14].mxu0  ;;  %1564 = vmatprep.subr.bf16.mxu1 %v1563_v0  ;;  %v383_v10 = vadd.f32 %v382_v6, %v2021_v50  ;;  %v384_v11 = vpop.f32.mrb[2].mxu1 }
 0x213   :  { %v375_v14 = vadd.f32 %v374_v9, %v256_v49  ;;  %v488_v15 = vmax.f32 %v381_v5, 0.0  ;;  %v376_v16 = vpop.f32.mrb[15].mxu0  ;;  %1566 = vmatpush1.bf16.msra.mxu1 %v1565_v63  ;;  %v385_v17 = vadd.f32 %v384_v11, %v256_v49  ;;  %v386_v18 = vpop.f32.mrb[3].mxu1  ;;  %v480_v22 = vmax.f32 %v371_v3, 0.0  ;;  %v504_v9 = vld [vmem:[%s2095_s2] sm:$0xf] }
 0x214   :  { %v377_v19 = vadd.f32 %v376_v16, %v2021_v50  ;;  %v489_v20 = vmax.f32 %v383_v10, 0.0  ;;  %v387_v21 = vadd.f32 %v386_v18, %v2021_v50  ;;  %v481_v26 = vmax.f32 %v373_v8, 0.0 }
 0x215   :  { %v484_v23 = vmax.f32 %v375_v14, 0.0  ;;  %v492_v24 = vmax.f32 %v385_v17, 0.0 }
 0x216   :  { %v485_v27 = vmax.f32 %v377_v19, 0.0  ;;  %v493_v28 = vmax.f32 %v387_v21, 0.0 }
 0x217   :  { %v1569_v31 = vpack.c.bf16 %v484_v23, %v480_v22  ;;  %v1573_v32 = vpack.c.bf16 %v492_v24, %v488_v15 }
 0x218   :  { %v1567_v33 = vpack.c.bf16 %v485_v27, %v481_v26  ;;  %v1571_v34 = vpack.c.bf16 %v493_v28, %v489_v20  ;;  %v390_v35 = vpop.f32.mrb[4].mxu1  ;;  %v433_v36 = vpop.f32.mrb[16].mxu0 }
 0x219   :  { %v391_v37 = vadd.f32 %v390_v35, %v256_v49  ;;  %v434_v38 = vadd.f32 %v433_v36, %v2031_v25  ;;  %v392_v39 = vpop.f32.mrb[5].mxu1  ;;  %v435_v40 = vpop.f32.mrb[17].mxu0 }
 0x21a   :  { %v393_v41 = vadd.f32 %v392_v39, %v2021_v50  ;;  %v436_v42 = vadd.f32 %v435_v40, %v2033_v30  ;;  %v394_v43 = vpop.f32.mrb[6].mxu1  ;;  %v437_v44 = vpop.f32.mrb[18].mxu0  ;;  %1568 = vmatprep.subr.bf16.mxu1 %v1567_v33 }
 0x21b   :  { %v395_v47 = vadd.f32 %v394_v43, %v256_v49  ;;  %v438_v51 = vadd.f32 %v437_v44, %v2031_v25  ;;  %v396_v52 = vpop.f32.mrb[7].mxu1  ;;  %v439_v53 = vpop.f32.mrb[19].mxu0  ;;  %1570 = vmatpush1.bf16.msra.mxu1 %v1569_v31  ;;  %v496_v56 = vmax.f32 %v391_v37, 0.0  ;;  %v474_v57 = vmax.f32 %v434_v38, 0.0 }
 0x21c   :  { %v397_v54 = vadd.f32 %v396_v52, %v2021_v50  ;;  %v440_v55 = vadd.f32 %v439_v53, %v2033_v30  ;;  %1572 = vmatprep.subr.bf16.mxu1 %v1571_v34  ;;  %v497_v60 = vmax.f32 %v393_v41, 0.0  ;;  %v475_v61 = vmax.f32 %v436_v42, 0.0  ;;  %v1643_v53 = vld [vmem:[#allocation5 + $0xc0] sm:$0xff]  }
 0x21d   :  { %v500_v58 = vmax.f32 %v395_v47, 0.0  ;;  %v478_v59 = vmax.f32 %v438_v51, 0.0 }
 0x21e   :  { %v501_v62 = vmax.f32 %v397_v54, 0.0  ;;  %v479_v63 = vmax.f32 %v440_v55, 0.0  ;;  %v1645_v54 = vld [vmem:[#allocation5 + $0x80] sm:$0xff]   ;;  %v1647_v55 = vld [vmem:[#allocation5 + $0xc8] sm:$0xff]  }
 0x21f   :  { %v1577_v0 = vpack.c.bf16 %v500_v58, %v496_v56  ;;  %v1581_v49 = vpack.c.bf16 %v478_v59, %v474_v57  ;;  %1574 = vmatpush1.bf16.msra.mxu1 %v1573_v32  ;;  %v1650_v56 = vld [vmem:[#allocation5 + $0x78] sm:$0xff]   ;;  %v1653_v58 = vld [vmem:[#allocation5 + $0x90] sm:$0xff]  }
 0x220   :  { %v1575_v1 = vpack.c.bf16 %v501_v62, %v497_v60  ;;  %v1579_v2 = vpack.c.bf16 %v479_v63, %v475_v61  ;;  %v443_v3 = vpop.f32.mrb[20].mxu0  ;;  %v1652_v57 = vld [vmem:[#allocation5 + $0x38] sm:$0xff]   ;;  %1495 = vmatprep.subr.bf16.mxu0 %v1650_v56  ;;  %v1656_v61 = vld [vmem:[#allocation5 + $0xe0] sm:$0xff]   ;;  %v1658_v63 = vld [vmem:[#allocation5 + $0xe8] sm:$0xff]  }
 0x221   :  { %v444_v4 = vadd.f32 %v443_v3, %v2031_v25  ;;  %v445_v50 = vpop.f32.mrb[21].mxu0  ;;  %1496 = vmatpush3.bf16.msra.mxu0 %v1652_v57  ;;  %v1654_v59 = vld [vmem:[#allocation5 + $0xd8] sm:$0xff]   ;;  %v1657_v62 = vld [vmem:[#allocation5 + $0xa0] sm:$0xff]   ;;  %v1692_v56 = vld [vmem:[#allocation8 + $0x50] sm:$0xff]  }
 0x222   :  { %v446_v5 = vadd.f32 %v445_v50, %v2033_v30  ;;  %v447_v6 = vpop.f32.mrb[22].mxu0  ;;  %1576 = vmatprep.subr.bf16.mxu1 %v1575_v1  ;;  %v1655_v60 = vld [vmem:[#allocation5 + $0x98] sm:$0xff]   ;;  %v1661_v1 = vld [vmem:[#allocation5 + $0xb0] sm:$0xff]  }
 0x223   :  { %v448_v7 = vadd.f32 %v447_v6, %v2031_v25  ;;  %v449_v8 = vpop.f32.mrb[23].mxu0  ;;  %1578 = vmatpush1.bf16.msra.mxu1 %v1577_v0  ;;  %v482_v11 = vmax.f32 %v444_v4, 0.0  ;;  %v1659_v0 = vld [vmem:[#allocation5 + $0xa8] sm:$0xff]   ;;  %v1663_v3 = vld [vmem:[#allocation5 + $0xb8] sm:$0xff]  }
 0x224   :  { %v450_v10 = vadd.f32 %v449_v8, %v2033_v30  ;;  %1580 = vmatprep.subr.bf16.mxu1 %v1579_v2  ;;  %v483_v14 = vmax.f32 %v446_v5, 0.0  ;;  %v1662_v2 = vld [vmem:[#allocation5 + $0xf8] sm:$0xff]  }
 0x225   :  { %v486_v12 = vmax.f32 %v448_v7, 0.0  ;;  %v1694_v57 = vld [vmem:[#allocation8 + $0x58] sm:$0xff]  }
 0x226   :  { %v487_v15 = vmax.f32 %v450_v10, 0.0  ;;  %1403 = vmatmul.mubr.msk.f32.vlgmr.msra.gmra.mrb[8].mxu1 %vm161_vm0, %v504_v9 }
 0x227   :  { %v1585_v16 = vpack.c.bf16 %v486_v12, %v482_v11  ;;  %1582 = vmatpush1.bf16.msra.mxu1 %v1581_v49  ;;  %643 = vmatprep.mubr.f32.mxu1 %v1839_v29  ;;  %v1660_v49 = vld [vmem:[#allocation5 + $0xf0] sm:$0xff]  }
 0x228   :  { %v1583_v17 = vpack.c.bf16 %v487_v15, %v483_v14  ;;  %v453_v18 = vpop.f32.mrb[24].mxu0 }
 0x229   :  { %v454_v19 = vadd.f32 %v453_v18, %v2031_v25  ;;  %v455_v20 = vpop.f32.mrb[25].mxu0 }
 0x22a   :  { %v456_v21 = vadd.f32 %v455_v20, %v2033_v30  ;;  %v457_v22 = vpop.f32.mrb[26].mxu0  ;;  %1584 = vmatprep.subr.bf16.mxu1 %v1583_v17  ;;  %v718_v17 = vld [vmem:[%s2099_s6] sm:$0xf] }
 0x22b   :  { %v458_v23 = vadd.f32 %v457_v22, %v2031_v25  ;;  %v459_v24 = vpop.f32.mrb[27].mxu0  ;;  %1586 = vmatpush1.bf16.msra.mxu1 %v1585_v16  ;;  %v490_v27 = vmax.f32 %v454_v19, 0.0 }
 0x22c   :  { %v460_v26 = vadd.f32 %v459_v24, %v2033_v30  ;;  %v491_v31 = vmax.f32 %v456_v21, 0.0 }
 0x22d   :  { %v494_v28 = vmax.f32 %v458_v23, 0.0 }
 0x22e   :  { %v495_v32 = vmax.f32 %v460_v26, 0.0  ;;  %v1664_v26 = vld [vmem:[#allocation7] ss:$8 sps:$4 sm:$0xff]  }
 0x22f   :  { %v1589_v29 = vpack.c.bf16 %v494_v28, %v490_v27  ;;  %v1666_v27 = vld [vmem:[#allocation7 + $0x4] ss:$8 sps:$4 sm:$0xff]   ;;  %v1669_v28 = vld [vmem:[#allocation7 + $0x14] ss:$8 sps:$4 sm:$0xff]  }
 0x230   :  { %v1587_v33 = vpack.c.bf16 %v495_v32, %v491_v31  ;;  %v463_v34 = vpop.f32.mrb[28].mxu0  ;;  %1115 = vmatprep.subr.bf16.mxu0 %v1666_v27  ;;  %v1667_v31 = vld [vmem:[#allocation7 + $0x10] ss:$8 sps:$4 sm:$0xff]   ;;  %v1672_v32 = vld [vmem:[#allocation7 + $0x24] ss:$8 sps:$4 sm:$0xff]  }
 0x231   :  { %v464_v35 = vadd.f32 %v463_v34, %v2031_v25  ;;  %v465_v36 = vpop.f32.mrb[29].mxu0  ;;  %v1673_v34 = vld [vmem:[#allocation7 + $0x30] ss:$8 sps:$4 sm:$0xff]  }
 0x232   :  { %v466_v37 = vadd.f32 %v465_v36, %v2033_v30  ;;  %v467_v38 = vpop.f32.mrb[30].mxu0  ;;  %1588 = vmatprep.subr.bf16.mxu1 %v1587_v33  ;;  %v1675_v33 = vld [vmem:[#allocation7 + $0x34] ss:$8 sps:$4 sm:$0xff]  }
 0x233   :  { %v468_v39 = vadd.f32 %v467_v38, %v2031_v25  ;;  %v469_v40 = vpop.f32.mrb[31].mxu0  ;;  %1590 = vmatpush1.bf16.msra.mxu1 %v1589_v29  ;;  %v498_v42 = vmax.f32 %v464_v35, 0.0  ;;  %v1649_v25 = vld [vmem:[#allocation5 + $0x88] sm:$0xff]  }
 0x234   :  { %v470_v41 = vadd.f32 %v469_v40, %v2033_v30  ;;  %v499_v44 = vmax.f32 %v466_v37, 0.0  ;;  %v1651_v30 = vld [vmem:[#allocation5 + $0xd0] sm:$0xff]   ;;  %v1670_v29 = vld [vmem:[#allocation7 + $0x20] ss:$8 sps:$4 sm:$0xff]   ;;  %v1678_v40 = vld [vmem:[#allocation7 + $0x44] ss:$8 sps:$4 sm:$0xff]  }
 0x235   :  { %v502_v43 = vmax.f32 %v468_v39, 0.0 }
 0x236   :  { %v503_v47 = vmax.f32 %v470_v41, 0.0  ;;  %v1676_v41 = vld [vmem:[#allocation7 + $0x40] ss:$8 sps:$4 sm:$0xff]  }
 0x237   :  { %v1593_v51 = vpack.c.bf16 %v502_v43, %v498_v42  ;;  %v1679_v42 = vld [vmem:[#allocation7 + $0x50] ss:$8 sps:$4 sm:$0xff]   ;;  %v1681_v43 = vld [vmem:[#allocation7 + $0x54] ss:$8 sps:$4 sm:$0xff]  }
 0x238   :  { %v1591_v52 = vpack.c.bf16 %v503_v47, %v499_v44  ;;  %v1684_v44 = vld [vmem:[#allocation7 + $0x64] ss:$8 sps:$4 sm:$0xff]   ;;  %v1682_v47 = vld [vmem:[#allocation7 + $0x60] ss:$8 sps:$4 sm:$0xff]  }
 0x23a   :  { %1592 = vmatprep.subr.bf16.mxu1 %v1591_v52  ;;  %v1685_v52 = vld [vmem:[#allocation7 + $0x70] ss:$8 sps:$4 sm:$0xff]  }
 0x23b   :  { %1594 = vmatpush1.bf16.msra.mxu1 %v1593_v51  ;;  %v1687_v51 = vld [vmem:[#allocation7 + $0x74] ss:$8 sps:$4 sm:$0xff]  }
 0x23c   :  { %1503 = vmatprep.subr.bf16.mxu1 %v1643_v53  ;;  %v1688_v53 = vld [vmem:[#allocation8 + $0x40] sm:$0xff]  }
 0x23e   :  { %1404 = vmatmul.mubr.msk.f32.vlgmr.msra.gmra.mrb[10].mxu1 %vm161_vm0, %v504_v9 }
 0x23f   :  { %1504 = vmatpush3.bf16.msra.mxu1 %v1645_v54  ;;  %v1689_v54 = vld [vmem:[#allocation8] sm:$0xff]  }
 0x240   :  { %1505 = vmatprep.subr.bf16.mxu1 %v1647_v55  ;;  %v1690_v55 = vld [vmem:[#allocation8 + $0x48] sm:$0xff]  }
 0x243   :  { %1506 = vmatpush3.bf16.msra.mxu1 %v1649_v25  ;;  %v1691_v25 = vld [vmem:[#allocation8 + $0x8] sm:$0xff]  }
 0x244   :  { %1507 = vmatprep.subr.bf16.mxu1 %v1651_v30  ;;  %v1693_v30 = vld [vmem:[#allocation8 + $0x10] sm:$0xff]  }
 0x247   :  { %1508 = vmatpush3.bf16.msra.mxu1 %v1653_v58  ;;  %v1695_v58 = vld [vmem:[#allocation8 + $0x18] sm:$0xff]  }
 0x248   :  { %1509 = vmatprep.subr.bf16.mxu1 %v1654_v59  ;;  %v1696_v59 = vld [vmem:[#allocation8 + $0x60] sm:$0xff]  }
 0x24b   :  { %1510 = vmatpush3.bf16.msra.mxu1 %v1655_v60  ;;  %v1697_v60 = vld [vmem:[#allocation8 + $0x20] sm:$0xff]  }
 0x24c   :  { %1511 = vmatprep.subr.bf16.mxu1 %v1656_v61  ;;  %v1698_v61 = vld [vmem:[#allocation8 + $0x68] sm:$0xff]  }
 0x24f   :  { %1512 = vmatpush3.bf16.msra.mxu1 %v1657_v62  ;;  %v1699_v62 = vld [vmem:[#allocation8 + $0x28] sm:$0xff]  }
 0x250   :  { %1513 = vmatprep.subr.bf16.mxu1 %v1658_v63 }
 0x253   :  { %1514 = vmatpush3.bf16.msra.mxu1 %v1659_v0 }
 0x254   :  { %1515 = vmatprep.subr.bf16.mxu1 %v1660_v49 }
 0x257   :  { %1516 = vmatpush3.bf16.msra.mxu1 %v1661_v1 }
 0x258   :  { %1517 = vmatprep.subr.bf16.mxu1 %v1662_v2 }
 0x25b   :  { %1518 = vmatpush3.bf16.msra.mxu1 %v1663_v3 }
 0x25c   :  { %1525 = vmatprep.subr.bf16.mxu1 %v1688_v53 }
 0x2f9   :  { %v574_v4 = vpop.f32.mrb[8].mxu1 }
 0x2fa   :  { %v650_v50 = vpack.c.bf16 %v574_v4, %v574_v4  ;;  %v576_v5 = vpop.f32.mrb[9].mxu1  ;;  %v1700_v4 = vld [vmem:[#allocation8 + $0x70] sm:$0xff]  }
 0x2fb   :  { %v651_v6 = vpack.c.bf16 %v576_v5, %v576_v5  ;;  %v1702_v5 = vld [vmem:[#allocation8 + $0x78] sm:$0xff]  }
 0x2fd   :  { %943 = vmatprep.mubr.bf16.mxu0 %v651_v6  ;;  %v1703_v6 = vld [vmem:[#allocation8 + $0x38] sm:$0xff]  }
 0x2fe   :  { %944 = vmatmul.mubr.bf16.vlgmr.msra.gmra.mrb[32].mxu0 %v650_v50  ;;  %v1701_v50 = vld [vmem:[#allocation8 + $0x30] sm:$0xff]  }
 0x2ff   :  { %1147 = vmatprep.mubr.bf16.mxu0 %v1838_v13  ;;  %1116 = vmatpush1.bf16.msra.mxu0 %v1664_v26 }
 0x300   :  { %1117 = vmatprep.subr.bf16.mxu0 %v1669_v28  ;;  %v1471_v28 = vld [vmem:[%s2104_s11] ss:$0 sm:$0xff] }
 0x303   :  { %1118 = vmatpush1.bf16.msra.mxu0 %v1667_v31 }
 0x304   :  { %1119 = vmatprep.subr.bf16.mxu0 %v1672_v32  ;;  %v1472_v32 = vld [vmem:[%s2105_s12] ss:$0 sm:$0xff] }
 0x307   :  { %1120 = vmatpush1.bf16.msra.mxu0 %v1670_v29 }
 0x308   :  { %1121 = vmatprep.subr.bf16.mxu0 %v1675_v33 }
 0x30b   :  { %1122 = vmatpush1.bf16.msra.mxu0 %v1673_v34 }
 0x30c   :  { %1123 = vmatprep.subr.bf16.mxu0 %v1678_v40 }
 0x30f   :  { %1124 = vmatpush1.bf16.msra.mxu0 %v1676_v41 }
 0x310   :  { %1125 = vmatprep.subr.bf16.mxu0 %v1681_v43 }
 0x311   :  { %v645_v7 = vpop.f32.mrb[10].mxu1 }
 0x312   :  { %v647_v8 = vpop.f32.mrb[11].mxu1  ;;  %v652_v10 = vpack.c.bf16 %v645_v7, %v645_v7  ;;  %v1023_v7 = vld [vmem:[%s2101_s8] sm:$0x3] }
 0x313   :  { %v653_v9 = vpack.c.bf16 %v647_v8, %v647_v8  ;;  %1126 = vmatpush1.bf16.msra.mxu0 %v1679_v42  ;;  %v1028_v8 = vrot.slane %v1023_v7, %v255_v46  ;;  %v1453_v46 = vld [vmem:[%s2103_s10] ss:$0 sm:$0xff]  ;;  %s1840_s10 = smov [#allocation10]  }
 0x314   :  { %1127 = vmatprep.subr.bf16.mxu0 %v1684_v44  ;;  %s1364_s23 = sshll.u32 %s1840_s10, 4  ;;  %s1365_s23 = int_to_ptr.vmem [resolvable:$true] %s1364_s23 }
 0x315   :  { %983 = vmatprep.mubr.bf16.mxu1 %v653_v9  ;;  %v1032_v9 = vrot.slane %v1023_v7, %v259_v48  ;;  %s1798_s15 = scalar_lea.vmem %s1365_s23, 64  ;;  %p1803_p5 = scmp.lt.s32.totalorder %s1365_s23, %s1365_s23 }
 0x316   :  { %984 = vmatmul.mubr.bf16.vlgmr.msra.gmra.mrb[12].mxu1 %v652_v10  ;;  %p1799_p4 = scmp.ne.s32.totalorder %s1365_s23, %s1798_s15  ;;  %p1804_p6 = scmp.lt.s32.totalorder %s1798_s15, %s1798_s15 }
 0x317   :  { %1128 = vmatpush1.bf16.msra.mxu0 %v1682_v47  ;;  %1526 = vmatpush3.bf16.msra.mxu1 %v1689_v54 }
 0x318   :  { %1129 = vmatprep.subr.bf16.mxu0 %v1687_v51  ;;  %1527 = vmatprep.subr.bf16.mxu1 %v1690_v55  ;;  %p1805_p7 = por %p1804_p6, %p1803_p5 }
 0x31a   :  { %p1806_p8 = pnand %p1805_p7, %p1799_p4 }
 0x31b   :  { %1130 = vmatpush1.bf16.msra.mxu0 %v1685_v52  ;;  %1528 = vmatpush3.bf16.msra.mxu1 %v1691_v25 }
 0x31c   :  { %1529 = vmatprep.subr.bf16.mxu1 %v1692_v56 }
 0x31f   :  { %1530 = vmatpush3.bf16.msra.mxu1 %v1693_v30 }
 0x320   :  { %1531 = vmatprep.subr.bf16.mxu1 %v1694_v57 }
 0x323   :  { %1532 = vmatpush3.bf16.msra.mxu1 %v1695_v58 }
 0x324   :  { %1533 = vmatprep.subr.bf16.mxu1 %v1696_v59 }
 0x327   :  { %1534 = vmatpush3.bf16.msra.mxu1 %v1697_v60 }
 0x328   :  { %1535 = vmatprep.subr.bf16.mxu1 %v1698_v61 }
 0x32b   :  { %1536 = vmatpush3.bf16.msra.mxu1 %v1699_v62 }
 0x32c   :  { %1537 = vmatprep.subr.bf16.mxu1 %v1700_v4 }
 0x32f   :  { %1538 = vmatpush3.bf16.msra.mxu1 %v1701_v50 }
 0x330   :  { %1539 = vmatprep.subr.bf16.mxu1 %v1702_v5 }
 0x333   :  { %1540 = vmatpush3.bf16.msra.mxu1 %v1703_v6 }
 0x3d1   :  { %v1497_v11 = vpop.f32.mrb[32].mxu0 }
 0x3d2   :  { %v1498_v12 = vpop.f32.mrb[33].mxu0 }
 0x3d3   :  { %v1499_v14 = vadd.f32 %v1498_v12, %v1497_v11  ;;  %v1500_v15 = vpop.f32.mrb[34].mxu0 }
 0x3d4   :  { %v1501_v16 = vpop.f32.mrb[35].mxu0 }
 0x3d5   :  { %v946_v20 = vadd.f32 %v1499_v14, %v718_v17 }
 0x3e9   :  { %v1519_v18 = vpop.f32.mrb[12].mxu1 }
 0x3ea   :  { %v1520_v19 = vpop.f32.mrb[13].mxu1 }
 0x3eb   :  { %v1521_v21 = vadd.f32 %v1520_v19, %v1519_v18  ;;  %v1522_v13 = vpop.f32.mrb[14].mxu1 }
 0x3ec   :  { %v1523_v22 = vpop.f32.mrb[15].mxu1 }
 0x3ed   :  { %v986_v23 = vadd.f32 %v1521_v21, %v946_v20 }
 0x3ef   :  { %v992_v24 = vsel %vm991_vm2, %v986_v23, 0.0 }
 0x3f0   :  { %993 = vadd.xlane.f32.xlu0 %v992_v24 }
 0x47d   :  { %v994_v35 = vpop.xlane.xlu0 %993 }
 0x47e   :  { %v996_v36 = vmul.f32 0.0078125, %v994_v35 }
 0x480   :  { %v997_v37 = vsub.f32 %v986_v23, %v996_v36 }
 0x482   :  { %v998_v38 = vmul.f32 %v997_v37, %v997_v37 }
 0x484   :  { %v999_v39 = vsel %vm991_vm2, %v998_v38, 0.0 }
 0x485   :  { %1000 = vadd.xlane.f32.xlu0 %v999_v39 }
 0x512   :  { %v1001_v63 = vpop.xlane.xlu0 %1000 }
 0x513   :  { %v1002_v0 = vmul.f32 0.0078125, %v1001_v63 }
 0x515   :  { %v1003_v49 = vadd.f32 1e-05, %v1002_v0 }
 0x517   :  { %1704 = vrsqrt.f32 %v1003_v49 }
 0x521   :  { %v1705_v1 = vpop.eup %1704 }
 0x522   :  { %v1005_v2 = vmul.f32 %v1705_v1, %v997_v37 }
 0x524   :  { %v1006_v3 = vpack.c.bf16 %v1005_v2, %v1005_v2 }
 0x526   :  { %1148 = vmatmul.mubr.bf16.vlgmr.msra.gmra.mrb[36].mxu0 %v1006_v3 }
 0x5f9   :  { %v1149_v10 = vpop.f32.mrb[36].mxu0 }
 0x5fa   :  { %v1150_v11 = vadd.f32 %v1149_v10, %v1028_v8  ;;  %v1151_v12 = vpop.f32.mrb[37].mxu0 }
 0x5fb   :  { %v1152_v14 = vadd.f32 %v1151_v12, %v1032_v9  ;;  %v1153_v15 = vpop.f32.mrb[38].mxu0 }
 0x5fc   :  { %v1156_v16 = vmax.f32 %v1150_v11, 0.0  ;;  %v1154_v17 = vpop.f32.mrb[39].mxu0 }
 0x5fd   :  { %v1157_v18 = vmax.f32 %v1152_v14, 0.0 }
 0x5fe   :  { %v1158_v20 = vpack.c.bf16 %v1156_v16, %v1156_v16 }
 0x5ff   :  { %v1159_v19 = vpack.c.bf16 %v1157_v18, %v1157_v18 }
 0x601   :  { %1327 = vmatprep.mubr.bf16.mxu1 %v1159_v19 }
 0x602   :  { %1328 = vmatmul.mubr.bf16.vlgmr.msra.gmra.mrb[16].mxu1 %v1158_v20 }
 0x6d5   :  { %v1541_v21 = vpop.f32.mrb[16].mxu1 }
 0x6d6   :  { %v1542_v13 = vpop.f32.mrb[17].mxu1 }
 0x6d7   :  { %v1543_v45 = vadd.f32 %v1542_v13, %v1541_v21  ;;  %v1544_v48 = vpop.f32.mrb[18].mxu1 }
 0x6d8   :  { %v1545_v22 = vpop.f32.mrb[19].mxu1 }
 0x6d9   :  { %v1330_v23 = vadd.f32 %v1543_v45, %v1453_v46 }
 0x6db   :  { %v1470_v24 = vmul.f32 -1.442695, %v1330_v23 }
 0x6dd   :  { %1706 = vpow2.f32 %v1470_v24 }
 0x6e7   :  { %v1707_v26 = vpop.eup %1706 }
 0x6e8   :  { %v1338_v27 = vadd.f32 1.0, %v1707_v26 }
 0x6ea   :  { %1708 = vrcp.f32 %v1338_v27 }
 0x6f4   :  { %v1709_v31 = vpop.eup %1708 }
 0x6f5   :  { %v1348_v29 = vmul.f32 %v1709_v31, %v1471_v28 }
 0x6f7   :  { %v1356_v33 = vadd.f32 %v1472_v32, %v1348_v29 }
 0x6f9   :  { %1357 = vst [vmem:[#allocation10] sm:$0xf] %v1356_v33 }
 0x6fa   :  { %1809 = shalt.err (!%p1806_p8)
}
 0x6fb   :  { %s1810_s9 = scalar_lea.hbm %s2106_s13, 64 }
 0x6fc   :  { %p1811_p9 = scmp.ne.s32.totalorder %s2106_s13, %s1810_s9  ;;  %p1814_p10 = scmp.lt.u32.totalorder %s1810_s9, %s2106_s13 }
 0x6fe   :  { %p1816_p11 = pnand %p1814_p10, %p1811_p9 }
 0x700   :  { %1819 = shalt.err (!%p1816_p11)
}
 0x701   :  { %1367 = dma.vmem_to_hbm [thread:$0]  %s1365_s23, 64, %s2106_s13, [#allocation4]  }
 0x702   :  { %1826 = dma.done.wait [#allocation4], 64  }
 0x703   :  { %1827 = vsyncadd [#allocation4], 4294967232 }
 0x704   :  { %1371 = vsyncpa [#allocation3], 1 }
 0x705   :  { %1372 = vsyncpa [#allocation6], 1 }
 0x706   :  { %1373 = vsyncpa [#allocation9], 1 }
 0x707   :  { %1374 = vsyncpa [#allocation4], 1 }

</bundles_post_ra>
